<compile_context>
chip_gen: v7x
topology: tpu7x:2x2x1
jax: 0.10.0
libtpu: 0.0.40
codegen_flags: <defaults>
</compile_context>

<pallas_src>
import math

import jax
import jax.numpy as jnp
import numpy as np
from jax.experimental import pallas as pl
from jax.experimental.pallas import tpu as pltpu


def _round_up(x, m):
    return -(-x // m) * m


def _embed_kernel(x_ref, w_ref, b_ref, o_ref):
    # One grid step: [row_tile, d_inp] @ [d_inp, d_model] + bias  on the MXU/VPU.
    o_ref[...] = (
        jnp.dot(x_ref[...], w_ref[...], preferred_element_type=jnp.float32)
        + b_ref[...]
    ).astype(o_ref.dtype)


def make_time_feature_embedding_kernel(n_rows, d_inp, d_model, row_tile):
    """Builds the pallas_call for a flattened [n_rows, d_inp] input."""
    assert n_rows % row_tile == 0
    grid = (n_rows // row_tile,)

    grid_spec = pltpu.PrefetchScalarGridSpec(
        num_scalar_prefetch=0,
        grid=grid,
        in_specs=[
            pl.BlockSpec((row_tile, d_inp), lambda i: (i, 0)),   # x rows
            pl.BlockSpec((d_inp, d_model), lambda i: (0, 0)),    # W (pre-transposed)
            pl.BlockSpec((1, d_model), lambda i: (0, 0)),        # bias
        ],
        out_specs=pl.BlockSpec((row_tile, d_model), lambda i: (i, 0)),
    )

    return pl.pallas_call(
        _embed_kernel,
        grid_spec=grid_spec,
        out_shape=jax.ShapeDtypeStruct((n_rows, d_model), jnp.float32),
        compiler_params=pltpu.CompilerParams(dimension_semantics=("parallel",)),
    )


def time_feature_embedding_forward(x, weight, bias):
    """y = x @ weight + bias, where weight is stored [d_inp, d_model] (= W^T of nn.Linear).

    x may have any leading dims, last dim = d_inp. Returns [..., d_model].
    """
    *lead, d_inp = x.shape
    d_model = weight.shape[1]
    n = int(np.prod(lead)) if lead else 1

    x2 = x.reshape(n, d_inp).astype(jnp.float32)

    # Collapse the grid: whole input in one step for small N; cap at 512 rows
    # per step (multiple of the 8-row sublane tile) so very large N still
    # yields a parallel grid for v7x's dual TensorCores.
    row_tile = min(_round_up(n, 8), 512)
    n_pad = _round_up(n, row_tile)
    if n_pad != n:
        x2 = jnp.pad(x2, ((0, n_pad - n), (0, 0)))

    f = make_time_feature_embedding_kernel(n_pad, d_inp, d_model, row_tile)
    out = f(x2, weight.astype(jnp.float32), bias.reshape(1, d_model).astype(jnp.float32))
    return out[:n].reshape(*lead, d_model)


def reference_forward(x, weight, bias):
    """Pure-JAX reference of the same forward for a sanity check."""
    return x @ weight + bias


if __name__ == "__main__":
    # Module-consistent small shapes: freq='h' -> d_inp=4, d_model=32, batch=2, seq=8.
    B, L, d_inp, d_model = 2, 8, 4, 32

    key = jax.random.PRNGKey(0)
    k_w, k_b, k_x = jax.random.split(key, 3)

    bound = 1.0 / math.sqrt(d_inp)  # nn.Linear default init bound
    # Weight stored pre-transposed as [d_inp, d_model] (= W^T of nn.Linear).
    weight = jax.random.uniform(k_w, (d_inp, d_model), jnp.float32, -bound, bound)
    bias = jax.random.uniform(k_b, (d_model,), jnp.float32, -bound, bound)

    x = jax.random.normal(k_x, (B, L, d_inp), jnp.float32)

    out = jax.block_until_ready(time_feature_embedding_forward(x, weight, bias))
    ref = jax.block_until_ready(reference_forward(x, weight, bias))

    np.testing.assert_allclose(np.asarray(out), np.asarray(ref), rtol=1e-5, atol=1e-5)
    assert out.shape == (B, L, d_model)

    print("KERNEL_OK")
</pallas_src>

<mosaic_0001>
module attributes {stable_mosaic.version = 11 : i64} {
  func.func @_embed_kernel(%arg0: i32, %arg1: memref<16x4xf32, #tpu.memory_space<vmem>>, %arg2: memref<4x32xf32, #tpu.memory_space<vmem>>, %arg3: memref<1x32xf32, #tpu.memory_space<vmem>>, %arg4: memref<16x32xf32, #tpu.memory_space<vmem>>) attributes {dimension_semantics = [#tpu.dimension_semantics<parallel>], iteration_bounds = array<i64: 1>, scalar_prefetch = 0 : i64, scratch_operands = 0 : i64, tpu.core_type = #tpu.core_type<tc>, window_params = [{transform_indices = @transform_0, window_bounds = array<i64: 16, 4>}, {pipeline_mode = #tpu.pipeline_mode<synchronous>, transform_indices = @transform_1, window_bounds = array<i64: 4, 32>}, {pipeline_mode = #tpu.pipeline_mode<synchronous>, transform_indices = @transform_2, window_bounds = array<i64: 1, 32>}, {transform_indices = @transform_3, window_bounds = array<i64: 16, 32>}]} {
    %c0 = arith.constant 0 : index
    %c0_0 = arith.constant 0 : index
    %0 = vector.load %arg1[%c0, %c0_0] : memref<16x4xf32, #tpu.memory_space<vmem>>, vector<16x4xf32>
    %c0_1 = arith.constant 0 : index
    %c0_2 = arith.constant 0 : index
    %1 = vector.load %arg2[%c0_1, %c0_2] : memref<4x32xf32, #tpu.memory_space<vmem>>, vector<4x32xf32>
    %cst = arith.constant dense<0.000000e+00> : vector<16x32xf32>
    %2 = tpu.matmul %0, %1, %cst {dimension_numbers = #tpu.dot_dimension_numbers<[1], [0], [0], [1], [0, 0, 1, 1], [], []>} : vector<16x4xf32>, vector<4x32xf32>, vector<16x32xf32> -> vector<16x32xf32>
    %c0_3 = arith.constant 0 : index
    %c0_4 = arith.constant 0 : index
    %3 = vector.load %arg3[%c0_3, %c0_4] : memref<1x32xf32, #tpu.memory_space<vmem>>, vector<1x32xf32>
    %4 = vector.broadcast %3 : vector<1x32xf32> to vector<16x32xf32>
    %5 = arith.addf %2, %4 : vector<16x32xf32>
    %c0_5 = arith.constant 0 : index
    %c0_6 = arith.constant 0 : index
    %6 = vector.load %arg4[%c0_5, %c0_6] : memref<16x32xf32, #tpu.memory_space<vmem>>, vector<16x32xf32>
    tpu.vector_store %arg4[%c0_5, %c0_6], %5 {strides = array<i32>} : memref<16x32xf32, #tpu.memory_space<vmem>>, vector<16x32xf32>,
    return
  }
  func.func @transform_0(%arg0: i32) -> (i32, i32) {
    %c0_i32 = arith.constant 0 : i32
    %c0_i32_0 = arith.constant 0 : i32
    return %arg0, %c0_i32 : i32, i32
  }
  func.func @transform_1(%arg0: i32) -> (i32, i32) {
    %c0_i32 = arith.constant 0 : i32
    %c0_i32_0 = arith.constant 0 : i32
    %c0_i32_1 = arith.constant 0 : i32
    return %c0_i32, %c0_i32_0 : i32, i32
  }
  func.func @transform_2(%arg0: i32) -> (i32, i32) {
    %c0_i32 = arith.constant 0 : i32
    %c0_i32_0 = arith.constant 0 : i32
    %c0_i32_1 = arith.constant 0 : i32
    return %c0_i32, %c0_i32_0 : i32, i32
  }
  func.func @transform_3(%arg0: i32) -> (i32, i32) {
    %c0_i32 = arith.constant 0 : i32
    %c0_i32_0 = arith.constant 0 : i32
    return %arg0, %c0_i32 : i32, i32
  }
}

</mosaic_0001>

<bundles_post_ra>
// kernel: tpu_custom_call.1
= control target key start
LH: loop header
LB: loop body
LE: loop exit
PB: predicated region body
PF: predicated region fallthrough
CT: control target
= control target key end

     0   :  { %vm32_vm0 = vcmask 1043456   ;;  %vm25_vm1 = vcmask 31744   ;;  %s216_s0 = inlined_call_operand.vmem [shape: f32[16,4], index: 0, kind: input, shape index: {}]   ;;  %s217_s1 = inlined_call_operand.vmem [shape: f32[4,32], index: 1, kind: input, shape index: {}]   ;;  %s218_s2 = inlined_call_operand.vmem [shape: f32[1,32], index: 2, kind: input, shape index: {}]   ;;  %s219_s3 = inlined_call_operand.hbm [shape: f32[16,32], index: 3, kind: output, shape index: {}]  }
   0x1   :  { %v17_v0 = vld [vmem:[%s217_s1] sm:$0xf]  ;;  %v16_v2 = vld [vmem:[%s216_s0 + $0x8] sm:$0xff] }
   0x2   :  { %v15_v1 = vld [vmem:[%s216_s0] sm:$0xff]  ;;  %137 = vmatprep.subr.msk.mxu0 %vm32_vm0, %v17_v0 }
   0x3   :  { %139 = vmatprep.mubr.msk.f32.mxu0 %vm25_vm1, %v15_v1 }
   0x4   :  { %8 = vsyncpa [#allocation3], 0  ;;  %138 = vmatpush3.msk.msra.mxu0 %vm32_vm0, %v17_v0  ;;  %v130_v3 = vld [vmem:[%s218_s2] ss:$0 sm:$0xff]  ;;  %s169_s1 = smov [#allocation2]   ;;  %vm111_vm2 = vcmask 261120  }
   0x5   :  { %140 = vmatmul.mubr.msk.f32.vlgmr.msra.gmra.mrb[0].mxu0 %vm25_vm1, %v16_v2  ;;  %s119_s20 = sshll.u32 %s169_s1, 4  ;;  %s120_s20 = int_to_ptr.vmem [resolvable:$true] %s119_s20 }
   0x6   :  { %s145_s0 = scalar_lea.vmem %s120_s20, 256  ;;  %p150_p1 = scmp.lt.s32.totalorder %s120_s20, %s120_s20 }
   0x7   :  { %p146_p0 = scmp.ne.s32.totalorder %s120_s20, %s145_s0  ;;  %p151_p2 = scmp.lt.s32.totalorder %s145_s0, %s145_s0 }
   0x9   :  { %p152_p3 = por %p151_p2, %p150_p1 }
   0xb   :  { %p153_p4 = pnand %p152_p3, %p146_p0 }
  0xd8   :  { %v141_v4 = vpop.f32.mrb[0].mxu0 }
  0xd9   :  { %v108_v5 = vadd.f32 %v141_v4, %v130_v3  ;;  %v102_v6 = vpop.f32.mrb[1].mxu0 }
  0xda   :  { %v103_v7 = vadd.f32 %v130_v3, %v102_v6 }
  0xdb   :  { %113 = vst.msk [vmem:[#allocation2 + $0x8] sm:$0xff] %vm111_vm2, %v108_v5 }
  0xdc   :  { %112 = vst.msk [vmem:[#allocation2] sm:$0xff] %vm111_vm2, %v103_v7 }
  0xdd   :  { %156 = shalt.err (!%p153_p4)
}
  0xde   :  { %s157_s2 = scalar_lea.hbm %s219_s3, 256 }
  0xdf   :  { %p158_p5 = scmp.ne.s32.totalorder %s219_s3, %s157_s2  ;;  %p161_p6 = scmp.lt.u32.totalorder %s157_s2, %s219_s3 }
  0xe1   :  { %p163_p7 = pnand %p161_p6, %p158_p5 }
  0xe3   :  { %166 = shalt.err (!%p163_p7)
}
  0xe4   :  { %s170_s27 = smov 128   ;;  %s171_s28 = smov 8  }
  0xe5   :  { %125 = dma.vmem_to_hbm [thread:$0]  %s120_s20, 256, %s219_s3, [#allocation3], %s170_s27, %s170_s27, %s171_s28  }
  0xe6   :  { %167 = dma.done.wait [#allocation3], 256  }
  0xe7   :  { %168 = vsyncadd [#allocation3], 4294967040 }
  0xe8   :  { %129 = vsyncpa [#allocation3], 1 }

</bundles_post_ra>
